<compile_context>
chip_gen: v7x
topology: tpu7x:2x2x1
jax: 0.10.0
libtpu: 0.0.40
codegen_flags: <defaults>
</compile_context>

<pallas_src>
import jax
import jax.numpy as jnp
from jax.experimental import pallas as pl
from jax.experimental.pallas import tpu as pltpu

EPS = 1e-5


def _make_kernel(count, compute_dtype):
    """Build the fused residual-block kernel (closure over static sizes)."""
    inv_count = 1.0 / float(count)

    def conv_bn_relu(x2d, bw_ref, s0, s2, sc, gamma, beta):
        # 3x3 conv = 3 dense matmuls (one per kernel row; kw/ci folded into K)
        # + 2 tiny row-shift matmuls implementing the kh offsets & zero pad.
        d0 = jnp.dot(x2d, bw_ref[0], preferred_element_type=jnp.float32)
        d1 = jnp.dot(x2d, bw_ref[1], preferred_element_type=jnp.float32)
        d2 = jnp.dot(x2d, bw_ref[2], preferred_element_type=jnp.float32)
        acc = (jnp.dot(s0, d0, preferred_element_type=jnp.float32)
               + d1
               + jnp.dot(s2, d2, preferred_element_type=jnp.float32))
        # (conv bias omitted: cancelled exactly by the BN mean subtraction)

        # Training-mode BN, single pass over `acc`; per-channel totals come out
        # of one MXU matmul against `sc`, already tiled across the lane axis.
        rs = jnp.sum(acc, axis=0, keepdims=True)           # (1, L)
        rq = jnp.sum(acc * acc, axis=0, keepdims=True)     # (1, L)
        mean = jnp.dot(rs, sc, preferred_element_type=jnp.float32) * inv_count
        ex2 = jnp.dot(rq, sc, preferred_element_type=jnp.float32) * inv_count
        var = ex2 - mean * mean                            # biased variance
        h = (acc - mean) * (jax.lax.rsqrt(var + EPS) * gamma) + beta
        return jnp.maximum(h, 0.0)                         # ReLU

    def kernel(x_ref, bw1_ref, bw2_ref, s0_ref, s2_ref, sc_ref,
               g1_ref, be1_ref, g2_ref, be2_ref, o_ref):
        x = x_ref[...]                                     # (R, L) input slab
        s0 = s0_ref[...]
        s2 = s2_ref[...]
        sc = sc_ref[...]

        h1 = conv_bn_relu(x, bw1_ref, s0, s2, sc, g1_ref[...], be1_ref[...])
        h2 = conv_bn_relu(h1.astype(compute_dtype), bw2_ref, s0, s2, sc,
                          g2_ref[...], be2_ref[...])

        # Residual add + final ReLU; the residual is the input slab itself.
        o_ref[...] = jnp.maximum(h2 + x.astype(jnp.float32), 0.0)

    return kernel


def residual_block(x_nchw, params, *, compute_dtype=jnp.float32):
    """stride=1 / downsample=None residual block.  x_nchw: (N, C, H, W) f32.

    compute_dtype: dtype of the conv matmul operands (accumulation stays f32).
    Use jnp.bfloat16 on v6e/v7x to halve VMEM/HBM traffic for the operands.
    """
    w1, b1, g1, be1, w2, b2, g2, be2 = params
    del b1, b2  # cancelled by training-mode BN mean subtraction (see header)
    N, C, H, W = x_nchw.shape
    assert w1.shape == (3, 3, C, C) and w2.shape == (3, 3, C, C)
    R, L = N * H, W * C
    f32 = jnp.float32

    # ---- layout plumbing (XLA glue): NCHW -> lane-dense (N*H, W*C) slab ----
    x_slab = (jnp.transpose(x_nchw, (0, 2, 3, 1))
              .reshape(R, L).astype(compute_dtype))

    # ---- block-banded weight expansion: fold (kw, ci) taps into K = W*C ----
    def expand(w_hwio):
        per_kh = []
        for kh in range(3):
            m = jnp.zeros((L, L), f32)
            for kw in range(3):
                # eye(W, k=1-kw) places the kw tap on the right off-diagonal;
                # out-of-range taps (zero padding) simply get no entry.
                m = m + jnp.kron(jnp.eye(W, k=1 - kw, dtype=f32),
                                 w_hwio[kh, kw].astype(f32))
            per_kh.append(m)
        return jnp.stack(per_kh).astype(compute_dtype)        # (3, L, L)

    bw1 = expand(w1)
    bw2 = expand(w2)

    # ---- row-shift matrices for the kh = 0 / 2 taps; block-diagonal per image
    #      so the zero padding at the top/bottom rows is implicit ----
    s0 = jnp.kron(jnp.eye(N, dtype=f32), jnp.eye(H, k=-1, dtype=f32))  # (R, R)
    s2 = jnp.kron(jnp.eye(N, dtype=f32), jnp.eye(H, k=+1, dtype=f32))  # (R, R)

    # ---- channel-selection matrix: (1,L) @ sc -> per-channel totals, tiled ----
    sc = jnp.kron(jnp.ones((W, W), f32), jnp.eye(C, dtype=f32))        # (L, L)

    # ---- BN affine params tiled across the lane axis ----
    tile_l = lambda v: jnp.tile(v.reshape(1, C).astype(f32), (1, W))   # (1, L)
    g1t, be1t, g2t, be2t = tile_l(g1), tile_l(be1), tile_l(g2), tile_l(be2)

    kernel = _make_kernel(N * H * W, compute_dtype)
    full = lambda shape: pl.BlockSpec(shape, lambda i: (0,) * len(shape))

    out_slab = pl.pallas_call(
        kernel,
        out_shape=jax.ShapeDtypeStruct((R, L), f32),
        grid=(1,),
        in_specs=[full((R, L)),
                  full((3, L, L)), full((3, L, L)),
                  full((R, R)), full((R, R)), full((L, L)),
                  full((1, L)), full((1, L)), full((1, L)), full((1, L))],
        out_specs=full((R, L)),
        compiler_params=pltpu.CompilerParams(
            dimension_semantics=("arbitrary",),
            vmem_limit_bytes=32 * 1024 * 1024),
    )(x_slab, bw1, bw2, s0, s2, sc, g1t, be1t, g2t, be2t)

    out = out_slab.reshape(N, H, W, C)
    return jnp.transpose(out, (0, 3, 1, 2))                # back to NCHW


def residual_block_ref(x_nchw, params):
    """Pure-JAX reference (same math, biases included) for a sanity check."""
    w1, b1, g1, be1, w2, b2, g2, be2 = params
    x = jnp.transpose(x_nchw, (0, 2, 3, 1)).astype(jnp.float32)

    def conv_bn_relu(h, w, b, g, be):
        y = jax.lax.conv_general_dilated(
            h, w, (1, 1), ((1, 1), (1, 1)),
            dimension_numbers=('NHWC', 'HWIO', 'NHWC'),
            precision=jax.lax.Precision.HIGHEST)
        y = y + b.reshape(1, 1, 1, -1)
        m = jnp.mean(y, axis=(0, 1, 2), keepdims=True)
        v = jnp.mean((y - m) ** 2, axis=(0, 1, 2), keepdims=True)
        y = (y - m) * jax.lax.rsqrt(v + EPS) * g.reshape(1, 1, 1, -1) \
            + be.reshape(1, 1, 1, -1)
        return jnp.maximum(y, 0.0)

    h = conv_bn_relu(x, w1, b1, g1, be1)
    h = conv_bn_relu(h, w2, b2, g2, be2)
    out = jnp.maximum(h + x, 0.0)
    return jnp.transpose(out, (0, 3, 1, 2))


if __name__ == "__main__":
    # Small deterministic problem consistent with the module:
    # in_channels == out_channels == 4, stride=1, downsample=None.
    N, C, H, W = 2, 4, 16, 16
    ks = jax.random.split(jax.random.PRNGKey(0), 9)

    x = jax.random.normal(ks[0], (N, C, H, W), jnp.float32)

    w1 = 0.2 * jax.random.normal(ks[1], (3, 3, C, C), jnp.float32)   # HWIO
    b1 = 0.1 * jax.random.normal(ks[2], (1, C), jnp.float32)
    g1 = 1.0 + 0.1 * jax.random.normal(ks[3], (1, C), jnp.float32)
    be1 = 0.1 * jax.random.normal(ks[4], (1, C), jnp.float32)

    w2 = 0.2 * jax.random.normal(ks[5], (3, 3, C, C), jnp.float32)
    b2 = 0.1 * jax.random.normal(ks[6], (1, C), jnp.float32)
    g2 = 1.0 + 0.1 * jax.random.normal(ks[7], (1, C), jnp.float32)
    be2 = 0.1 * jax.random.normal(ks[8], (1, C), jnp.float32)

    params = (w1, b1, g1, be1, w2, b2, g2, be2)

    out = residual_block(x, params)
    out = jax.block_until_ready(out)

    ref = residual_block_ref(x, params)
    assert out.shape == (N, C, H, W), out.shape
    assert jnp.allclose(out, ref, rtol=5e-2, atol=5e-2), \
        float(jnp.max(jnp.abs(out - ref)))

    print("KERNEL_OK")
</pallas_src>

<mosaic_0001>
module attributes {stable_mosaic.version = 11 : i64} {
  func.func @kernel(%arg0: i32, %arg1: memref<32x64xf32, #tpu.memory_space<vmem>>, %arg2: memref<3x64x64xf32, #tpu.memory_space<vmem>>, %arg3: memref<3x64x64xf32, #tpu.memory_space<vmem>>, %arg4: memref<32x32xf32, #tpu.memory_space<vmem>>, %arg5: memref<32x32xf32, #tpu.memory_space<vmem>>, %arg6: memref<64x64xf32, #tpu.memory_space<vmem>>, %arg7: memref<1x64xf32, #tpu.memory_space<vmem>>, %arg8: memref<1x64xf32, #tpu.memory_space<vmem>>, %arg9: memref<1x64xf32, #tpu.memory_space<vmem>>, %arg10: memref<1x64xf32, #tpu.memory_space<vmem>>, %arg11: memref<32x64xf32, #tpu.memory_space<vmem>>) attributes {dimension_semantics = [#tpu.dimension_semantics<arbitrary>], iteration_bounds = array<i64: 1>, scalar_prefetch = 0 : i64, scratch_operands = 0 : i64, tpu.core_type = #tpu.core_type<tc>, window_params = [{pipeline_mode = #tpu.pipeline_mode<synchronous>, transform_indices = @transform_0, window_bounds = array<i64: 32, 64>}, {pipeline_mode = #tpu.pipeline_mode<synchronous>, transform_indices = @transform_1, window_bounds = array<i64: 3, 64, 64>}, {pipeline_mode = #tpu.pipeline_mode<synchronous>, transform_indices = @transform_2, window_bounds = array<i64: 3, 64, 64>}, {pipeline_mode = #tpu.pipeline_mode<synchronous>, transform_indices = @transform_3, window_bounds = array<i64: 32, 32>}, {pipeline_mode = #tpu.pipeline_mode<synchronous>, transform_indices = @transform_4, window_bounds = array<i64: 32, 32>}, {pipeline_mode = #tpu.pipeline_mode<synchronous>, transform_indices = @transform_5, window_bounds = array<i64: 64, 64>}, {pipeline_mode = #tpu.pipeline_mode<synchronous>, transform_indices = @transform_6, window_bounds = array<i64: 1, 64>}, {pipeline_mode = #tpu.pipeline_mode<synchronous>, transform_indices = @transform_7, window_bounds = array<i64: 1, 64>}, {pipeline_mode = #tpu.pipeline_mode<synchronous>, transform_indices = @transform_8, window_bounds = array<i64: 1, 64>}, {pipeline_mode = #tpu.pipeline_mode<synchronous>, transform_indices = @transform_9, window_bounds = array<i64: 1, 64>}, {pipeline_mode = #tpu.pipeline_mode<synchronous>, transform_indices = @transform_10, window_bounds = array<i64: 32, 64>}]} {
    %c0 = arith.constant 0 : index
    %c0_0 = arith.constant 0 : index
    %0 = vector.load %arg1[%c0, %c0_0] : memref<32x64xf32, #tpu.memory_space<vmem>>, vector<32x64xf32>
    %c0_1 = arith.constant 0 : index
    %c0_2 = arith.constant 0 : index
    %1 = vector.load %arg4[%c0_1, %c0_2] : memref<32x32xf32, #tpu.memory_space<vmem>>, vector<32x32xf32>
    %c0_3 = arith.constant 0 : index
    %c0_4 = arith.constant 0 : index
    %2 = vector.load %arg5[%c0_3, %c0_4] : memref<32x32xf32, #tpu.memory_space<vmem>>, vector<32x32xf32>
    %c0_5 = arith.constant 0 : index
    %c0_6 = arith.constant 0 : index
    %3 = vector.load %arg6[%c0_5, %c0_6] : memref<64x64xf32, #tpu.memory_space<vmem>>, vector<64x64xf32>
    %c0_7 = arith.constant 0 : index
    %c0_8 = arith.constant 0 : index
    %4 = vector.load %arg7[%c0_7, %c0_8] : memref<1x64xf32, #tpu.memory_space<vmem>>, vector<1x64xf32>
    %c0_9 = arith.constant 0 : index
    %c0_10 = arith.constant 0 : index
    %5 = vector.load %arg8[%c0_9, %c0_10] : memref<1x64xf32, #tpu.memory_space<vmem>>, vector<1x64xf32>
    %c0_11 = arith.constant 0 : index
    %c0_12 = arith.constant 0 : index
    %c0_13 = arith.constant 0 : index
    %6 = vector.load %arg2[%c0_11, %c0_12, %c0_13] : memref<3x64x64xf32, #tpu.memory_space<vmem>>, vector<1x64x64xf32>
    %7 = vector.shape_cast %6 : vector<1x64x64xf32> to vector<64x64xf32>
    %cst = arith.constant dense<0.000000e+00> : vector<32x64xf32>
    %8 = tpu.matmul %0, %7, %cst {dimension_numbers = #tpu.dot_dimension_numbers<[1], [0], [0], [1], [0, 0, 1, 1], [], []>} : vector<32x64xf32>, vector<64x64xf32>, vector<32x64xf32> -> vector<32x64xf32>
    %c1 = arith.constant 1 : index
    %c0_14 = arith.constant 0 : index
    %c0_15 = arith.constant 0 : index
    %9 = vector.load %arg2[%c1, %c0_14, %c0_15] : memref<3x64x64xf32, #tpu.memory_space<vmem>>, vector<1x64x64xf32>
    %10 = vector.shape_cast %9 : vector<1x64x64xf32> to vector<64x64xf32>
    %cst_16 = arith.constant dense<0.000000e+00> : vector<32x64xf32>
    %11 = tpu.matmul %0, %10, %cst_16 {dimension_numbers = #tpu.dot_dimension_numbers<[1], [0], [0], [1], [0, 0, 1, 1], [], []>} : vector<32x64xf32>, vector<64x64xf32>, vector<32x64xf32> -> vector<32x64xf32>
    %c2 = arith.constant 2 : index
    %c0_17 = arith.constant 0 : index
    %c0_18 = arith.constant 0 : index
    %12 = vector.load %arg2[%c2, %c0_17, %c0_18] : memref<3x64x64xf32, #tpu.memory_space<vmem>>, vector<1x64x64xf32>
    %13 = vector.shape_cast %12 : vector<1x64x64xf32> to vector<64x64xf32>
    %cst_19 = arith.constant dense<0.000000e+00> : vector<32x64xf32>
    %14 = tpu.matmul %0, %13, %cst_19 {dimension_numbers = #tpu.dot_dimension_numbers<[1], [0], [0], [1], [0, 0, 1, 1], [], []>} : vector<32x64xf32>, vector<64x64xf32>, vector<32x64xf32> -> vector<32x64xf32>
    %cst_20 = arith.constant dense<0.000000e+00> : vector<32x64xf32>
    %15 = tpu.matmul %1, %8, %cst_20 {dimension_numbers = #tpu.dot_dimension_numbers<[1], [0], [0], [1], [0, 0, 1, 1], [], []>} : vector<32x32xf32>, vector<32x64xf32>, vector<32x64xf32> -> vector<32x64xf32>
    %16 = arith.addf %15, %11 : vector<32x64xf32>
    %cst_21 = arith.constant dense<0.000000e+00> : vector<32x64xf32>
    %17 = tpu.matmul %2, %14, %cst_21 {dimension_numbers = #tpu.dot_dimension_numbers<[1], [0], [0], [1], [0, 0, 1, 1], [], []>} : vector<32x32xf32>, vector<32x64xf32>, vector<32x64xf32> -> vector<32x64xf32>
    %18 = arith.addf %16, %17 : vector<32x64xf32>
    %cst_22 = arith.constant dense<0.000000e+00> : vector<64xf32>
    %19 = vector.multi_reduction <add>, %18, %cst_22 [0] : vector<32x64xf32> to vector<64xf32>
    %20 = vector.shape_cast %19 : vector<64xf32> to vector<1x64xf32>
    %21 = arith.mulf %18, %18 : vector<32x64xf32>
    %cst_23 = arith.constant dense<0.000000e+00> : vector<64xf32>
    %22 = vector.multi_reduction <add>, %21, %cst_23 [0] : vector<32x64xf32> to vector<64xf32>
    %23 = vector.shape_cast %22 : vector<64xf32> to vector<1x64xf32>
    %cst_24 = arith.constant dense<0.000000e+00> : vector<1x64xf32>
    %24 = tpu.matmul %20, %3, %cst_24 {dimension_numbers = #tpu.dot_dimension_numbers<[1], [0], [0], [1], [0, 0, 1, 1], [], []>} : vector<1x64xf32>, vector<64x64xf32>, vector<1x64xf32> -> vector<1x64xf32>
    %cst_25 = arith.constant 0.001953125 : f32
    %25 = vector.broadcast %cst_25 : f32 to vector<1x64xf32>
    %26 = arith.mulf %24, %25 : vector<1x64xf32>
    %cst_26 = arith.constant dense<0.000000e+00> : vector<1x64xf32>
    %27 = tpu.matmul %23, %3, %cst_26 {dimension_numbers = #tpu.dot_dimension_numbers<[1], [0], [0], [1], [0, 0, 1, 1], [], []>} : vector<1x64xf32>, vector<64x64xf32>, vector<1x64xf32> -> vector<1x64xf32>
    %cst_27 = arith.constant 0.001953125 : f32
    %28 = vector.broadcast %cst_27 : f32 to vector<1x64xf32>
    %29 = arith.mulf %27, %28 : vector<1x64xf32>
    %30 = arith.mulf %26, %26 : vector<1x64xf32>
    %31 = arith.subf %29, %30 : vector<1x64xf32>
    %32 = vector.broadcast %26 : vector<1x64xf32> to vector<32x64xf32>
    %33 = arith.subf %18, %32 : vector<32x64xf32>
    %cst_28 = arith.constant 9.99999974E-6 : f32
    %34 = vector.broadcast %cst_28 : f32 to vector<1x64xf32>
    %35 = arith.addf %31, %34 : vector<1x64xf32>
    %36 = math.rsqrt %35 : vector<1x64xf32>
    %37 = arith.mulf %36, %4 : vector<1x64xf32>
    %38 = vector.broadcast %37 : vector<1x64xf32> to vector<32x64xf32>
    %39 = arith.mulf %33, %38 : vector<32x64xf32>
    %40 = vector.broadcast %5 : vector<1x64xf32> to vector<32x64xf32>
    %41 = arith.addf %39, %40 : vector<32x64xf32>
    %cst_29 = arith.constant 0.000000e+00 : f32
    %42 = vector.broadcast %cst_29 : f32 to vector<32x64xf32>
    %43 = arith.maximumf %41, %42 : vector<32x64xf32>
    %c0_30 = arith.constant 0 : index
    %c0_31 = arith.constant 0 : index
    %44 = vector.load %arg9[%c0_30, %c0_31] : memref<1x64xf32, #tpu.memory_space<vmem>>, vector<1x64xf32>
    %c0_32 = arith.constant 0 : index
    %c0_33 = arith.constant 0 : index
    %45 = vector.load %arg10[%c0_32, %c0_33] : memref<1x64xf32, #tpu.memory_space<vmem>>, vector<1x64xf32>
    %c0_34 = arith.constant 0 : index
    %c0_35 = arith.constant 0 : index
    %c0_36 = arith.constant 0 : index
    %46 = vector.load %arg3[%c0_34, %c0_35, %c0_36] : memref<3x64x64xf32, #tpu.memory_space<vmem>>, vector<1x64x64xf32>
    %47 = vector.shape_cast %46 : vector<1x64x64xf32> to vector<64x64xf32>
    %cst_37 = arith.constant dense<0.000000e+00> : vector<32x64xf32>
    %48 = tpu.matmul %43, %47, %cst_37 {dimension_numbers = #tpu.dot_dimension_numbers<[1], [0], [0], [1], [0, 0, 1, 1], [], []>} : vector<32x64xf32>, vector<64x64xf32>, vector<32x64xf32> -> vector<32x64xf32>
    %c1_38 = arith.constant 1 : index
    %c0_39 = arith.constant 0 : index
    %c0_40 = arith.constant 0 : index
    %49 = vector.load %arg3[%c1_38, %c0_39, %c0_40] : memref<3x64x64xf32, #tpu.memory_space<vmem>>, vector<1x64x64xf32>
    %50 = vector.shape_cast %49 : vector<1x64x64xf32> to vector<64x64xf32>
    %cst_41 = arith.constant dense<0.000000e+00> : vector<32x64xf32>
    %51 = tpu.matmul %43, %50, %cst_41 {dimension_numbers = #tpu.dot_dimension_numbers<[1], [0], [0], [1], [0, 0, 1, 1], [], []>} : vector<32x64xf32>, vector<64x64xf32>, vector<32x64xf32> -> vector<32x64xf32>
    %c2_42 = arith.constant 2 : index
    %c0_43 = arith.constant 0 : index
    %c0_44 = arith.constant 0 : index
    %52 = vector.load %arg3[%c2_42, %c0_43, %c0_44] : memref<3x64x64xf32, #tpu.memory_space<vmem>>, vector<1x64x64xf32>
    %53 = vector.shape_cast %52 : vector<1x64x64xf32> to vector<64x64xf32>
    %cst_45 = arith.constant dense<0.000000e+00> : vector<32x64xf32>
    %54 = tpu.matmul %43, %53, %cst_45 {dimension_numbers = #tpu.dot_dimension_numbers<[1], [0], [0], [1], [0, 0, 1, 1], [], []>} : vector<32x64xf32>, vector<64x64xf32>, vector<32x64xf32> -> vector<32x64xf32>
    %cst_46 = arith.constant dense<0.000000e+00> : vector<32x64xf32>
    %55 = tpu.matmul %1, %48, %cst_46 {dimension_numbers = #tpu.dot_dimension_numbers<[1], [0], [0], [1], [0, 0, 1, 1], [], []>} : vector<32x32xf32>, vector<32x64xf32>, vector<32x64xf32> -> vector<32x64xf32>
    %56 = arith.addf %55, %51 : vector<32x64xf32>
    %cst_47 = arith.constant dense<0.000000e+00> : vector<32x64xf32>
    %57 = tpu.matmul %2, %54, %cst_47 {dimension_numbers = #tpu.dot_dimension_numbers<[1], [0], [0], [1], [0, 0, 1, 1], [], []>} : vector<32x32xf32>, vector<32x64xf32>, vector<32x64xf32> -> vector<32x64xf32>
    %58 = arith.addf %56, %57 : vector<32x64xf32>
    %cst_48 = arith.constant dense<0.000000e+00> : vector<64xf32>
    %59 = vector.multi_reduction <add>, %58, %cst_48 [0] : vector<32x64xf32> to vector<64xf32>
    %60 = vector.shape_cast %59 : vector<64xf32> to vector<1x64xf32>
    %61 = arith.mulf %58, %58 : vector<32x64xf32>
    %cst_49 = arith.constant dense<0.000000e+00> : vector<64xf32>
    %62 = vector.multi_reduction <add>, %61, %cst_49 [0] : vector<32x64xf32> to vector<64xf32>
    %63 = vector.shape_cast %62 : vector<64xf32> to vector<1x64xf32>
    %cst_50 = arith.constant dense<0.000000e+00> : vector<1x64xf32>
    %64 = tpu.matmul %60, %3, %cst_50 {dimension_numbers = #tpu.dot_dimension_numbers<[1], [0], [0], [1], [0, 0, 1, 1], [], []>} : vector<1x64xf32>, vector<64x64xf32>, vector<1x64xf32> -> vector<1x64xf32>
    %cst_51 = arith.constant 0.001953125 : f32
    %65 = vector.broadcast %cst_51 : f32 to vector<1x64xf32>
    %66 = arith.mulf %64, %65 : vector<1x64xf32>
    %cst_52 = arith.constant dense<0.000000e+00> : vector<1x64xf32>
    %67 = tpu.matmul %63, %3, %cst_52 {dimension_numbers = #tpu.dot_dimension_numbers<[1], [0], [0], [1], [0, 0, 1, 1], [], []>} : vector<1x64xf32>, vector<64x64xf32>, vector<1x64xf32> -> vector<1x64xf32>
    %cst_53 = arith.constant 0.001953125 : f32
    %68 = vector.broadcast %cst_53 : f32 to vector<1x64xf32>
    %69 = arith.mulf %67, %68 : vector<1x64xf32>
    %70 = arith.mulf %66, %66 : vector<1x64xf32>
    %71 = arith.subf %69, %70 : vector<1x64xf32>
    %72 = vector.broadcast %66 : vector<1x64xf32> to vector<32x64xf32>
    %73 = arith.subf %58, %72 : vector<32x64xf32>
    %cst_54 = arith.constant 9.99999974E-6 : f32
    %74 = vector.broadcast %cst_54 : f32 to vector<1x64xf32>
    %75 = arith.addf %71, %74 : vector<1x64xf32>
    %76 = math.rsqrt %75 : vector<1x64xf32>
    %77 = arith.mulf %76, %44 : vector<1x64xf32>
    %78 = vector.broadcast %77 : vector<1x64xf32> to vector<32x64xf32>
    %79 = arith.mulf %73, %78 : vector<32x64xf32>
    %80 = vector.broadcast %45 : vector<1x64xf32> to vector<32x64xf32>
    %81 = arith.addf %79, %80 : vector<32x64xf32>
    %cst_55 = arith.constant 0.000000e+00 : f32
    %82 = vector.broadcast %cst_55 : f32 to vector<32x64xf32>
    %83 = arith.maximumf %81, %82 : vector<32x64xf32>
    %84 = arith.addf %83, %0 : vector<32x64xf32>
    %cst_56 = arith.constant 0.000000e+00 : f32
    %85 = vector.broadcast %cst_56 : f32 to vector<32x64xf32>
    %86 = arith.maximumf %84, %85 : vector<32x64xf32>
    %c0_57 = arith.constant 0 : index
    %c0_58 = arith.constant 0 : index
    %87 = vector.load %arg11[%c0_57, %c0_58] : memref<32x64xf32, #tpu.memory_space<vmem>>, vector<32x64xf32>
    tpu.vector_store %arg11[%c0_57, %c0_58], %86 {strides = array<i32>} : memref<32x64xf32, #tpu.memory_space<vmem>>, vector<32x64xf32>,
    return
  }
  func.func @transform_0(%arg0: i32) -> (i32, i32) {
    %c0_i32 = arith.constant 0 : i32
    %c0_i32_0 = arith.constant 0 : i32
    %c0_i32_1 = arith.constant 0 : i32
    return %c0_i32, %c0_i32_0 : i32, i32
  }
  func.func @transform_1(%arg0: i32) -> (i32, i32, i32) {
    %c0_i32 = arith.constant 0 : i32
    %c0_i32_0 = arith.constant 0 : i32
    %c0_i32_1 = arith.constant 0 : i32
    %c0_i32_2 = arith.constant 0 : i32
    return %c0_i32, %c0_i32_0, %c0_i32_1 : i32, i32, i32
  }
  func.func @transform_2(%arg0: i32) -> (i32, i32, i32) {
    %c0_i32 = arith.constant 0 : i32
    %c0_i32_0 = arith.constant 0 : i32
    %c0_i32_1 = arith.constant 0 : i32
    %c0_i32_2 = arith.constant 0 : i32
    return %c0_i32, %c0_i32_0, %c0_i32_1 : i32, i32, i32
  }
  func.func @transform_3(%arg0: i32) -> (i32, i32) {
    %c0_i32 = arith.constant 0 : i32
    %c0_i32_0 = arith.constant 0 : i32
    %c0_i32_1 = arith.constant 0 : i32
    return %c0_i32, %c0_i32_0 : i32, i32
  }
  func.func @transform_4(%arg0: i32) -> (i32, i32) {
    %c0_i32 = arith.constant 0 : i32
    %c0_i32_0 = arith.constant 0 : i32
    %c0_i32_1 = arith.constant 0 : i32
    return %c0_i32, %c0_i32_0 : i32, i32
  }
  func.func @transform_5(%arg0: i32) -> (i32, i32) {
    %c0_i32 = arith.constant 0 : i32
    %c0_i32_0 = arith.constant 0 : i32
    %c0_i32_1 = arith.constant 0 : i32
    return %c0_i32, %c0_i32_0 : i32, i32
  }
  func.func @transform_6(%arg0: i32) -> (i32, i32) {
    %c0_i32 = arith.constant 0 : i32
    %c0_i32_0 = arith.constant 0 : i32
    %c0_i32_1 = arith.constant 0 : i32
    return %c0_i32, %c0_i32_0 : i32, i32
  }
  func.func @transform_7(%arg0: i32) -> (i32, i32) {
    %c0_i32 = arith.constant 0 : i32
    %c0_i32_0 = arith.constant 0 : i32
    %c0_i32_1 = arith.constant 0 : i32
    return %c0_i32, %c0_i32_0 : i32, i32
  }
  func.func @transform_8(%arg0: i32) -> (i32, i32) {
    %c0_i32 = arith.constant 0 : i32
    %c0_i32_0 = arith.constant 0 : i32
    %c0_i32_1 = arith.constant 0 : i32
    return %c0_i32, %c0_i32_0 : i32, i32
  }
  func.func @transform_9(%arg0: i32) -> (i32, i32) {
    %c0_i32 = arith.constant 0 : i32
    %c0_i32_0 = arith.constant 0 : i32
    %c0_i32_1 = arith.constant 0 : i32
    return %c0_i32, %c0_i32_0 : i32, i32
  }
  func.func @transform_10(%arg0: i32) -> (i32, i32) {
    %c0_i32 = arith.constant 0 : i32
    %c0_i32_0 = arith.constant 0 : i32
    %c0_i32_1 = arith.constant 0 : i32
    return %c0_i32, %c0_i32_0 : i32, i32
  }
}

</mosaic_0001>

<bundles_post_ra>
// kernel: tpu_custom_call.1
= control target key start
LH: loop header
LB: loop body
LE: loop exit
PB: predicated region body
PF: predicated region fallthrough
CT: control target
= control target key end

     0   :  { %15 = vsyncpa [#allocation3], 0  ;;  %s2785_s0 = inlined_call_operand.hbm [shape: f32[32,64], index: 0, kind: input, shape index: {}]   ;;  %s2786_s1 = inlined_call_operand.hbm [shape: f32[3,64,64], index: 1, kind: input, shape index: {}]   ;;  %s2787_s2 = inlined_call_operand.hbm [shape: f32[3,64,64], index: 2, kind: input, shape index: {}]   ;;  %s2788_s3 = inlined_call_operand.hbm [shape: f32[32,32], index: 3, kind: input, shape index: {}]   ;;  %s2789_s4 = inlined_call_operand.hbm [shape: f32[32,32], index: 4, kind: input, shape index: {}]   ;;  %s2790_s5 = inlined_call_operand.hbm [shape: f32[64,64], index: 5, kind: input, shape index: {}]   ;;  %s2791_s6 = inlined_call_operand.vmem [shape: f32[1,64], index: 6, kind: input, shape index: {}]   ;;  %s2792_s7 = inlined_call_operand.vmem [shape: f32[1,64], index: 7, kind: input, shape index: {}]   ;;  %s2793_s8 = inlined_call_operand.vmem [shape: f32[1,64], index: 8, kind: input, shape index: {}]   ;;  %s2794_s9 = inlined_call_operand.vmem [shape: f32[1,64], index: 9, kind: input, shape index: {}]   ;;  %s2795_s10 = inlined_call_operand.hbm [shape: f32[32,64], index: 10, kind: output, shape index: {}]  }
   0x1   :  { %16 = vsyncpa [#allocation6], 0 }
   0x2   :  { %17 = vsyncpa [#allocation9], 0 }
   0x3   :  { %18 = vsyncpa [#allocation12], 0 }
   0x4   :  { %19 = vsyncpa [#allocation4], 0  ;;  %s2382_s13 = smov [#allocation5]   ;;  %s2383_s15 = smov [#allocation8]  }
   0x5   :  { %s37_s14 = sshll.u32 %s2382_s13, 4  ;;  %s61_s16 = sshll.u32 %s2383_s15, 4  ;;  %s38_s14 = int_to_ptr.vmem [resolvable:$true] %s37_s14  ;;  %s2449_s16 = int_to_ptr.vmem [resolvable:$true] %s61_s16 }
   0x6   :  { %s2218_s19 = scalar_lea.hbm %s2786_s1, 3072 }
   0x7   :  { %p2219_p0 = scmp.ne.s32.totalorder %s2786_s1, %s2218_s19  ;;  %p2222_p1 = scmp.lt.u32.totalorder %s2218_s19, %s2786_s1 }
   0x9   :  { %p2224_p2 = pnand %p2222_p1, %p2219_p0 }
   0xb   :  { %2227 = shalt.err (!%p2224_p2)
}
   0xc   :  { %s2228_s24 = scalar_lea.vmem %s38_s14, 3072  ;;  %p2233_p4 = scmp.lt.s32.totalorder %s38_s14, %s38_s14 }
   0xd   :  { %p2229_p3 = scmp.ne.s32.totalorder %s38_s14, %s2228_s24  ;;  %p2234_p5 = scmp.lt.s32.totalorder %s2228_s24, %s2228_s24 }
   0xf   :  { %p2235_p6 = por %p2234_p5, %p2233_p4 }
  0x11   :  { %p2236_p7 = pnand %p2235_p6, %p2229_p3 }
  0x13   :  { %2239 = shalt.err (!%p2236_p7)
}
  0x14   :  { %s2384_s25 = smov 128   ;;  %s2385_s26 = smov 8  }
  0x15   :  { %43 = dma.hbm_to_vmem [thread:$0]  %s2786_s1, 3072, %s38_s14, [#allocation6], %s2384_s25, %s2384_s25, %s2385_s26  }
  0x16   :  { %s2240_s11 = scalar_lea.hbm %s2788_s3, 512 }
  0x17   :  { %p2241_p8 = scmp.ne.s32.totalorder %s2788_s3, %s2240_s11  ;;  %p2244_p9 = scmp.lt.u32.totalorder %s2240_s11, %s2788_s3 }
  0x19   :  { %p2246_p10 = pnand %p2244_p9, %p2241_p8 }
  0x1b   :  { %2249 = shalt.err (!%p2246_p10)
}
  0x1c   :  { %s2250_s18 = scalar_lea.vmem %s2449_s16, 512  ;;  %p2255_p12 = scmp.lt.s32.totalorder %s2449_s16, %s2449_s16 }
  0x1d   :  { %p2251_p11 = scmp.ne.s32.totalorder %s2449_s16, %s2250_s18  ;;  %p2256_p13 = scmp.lt.s32.totalorder %s2250_s18, %s2250_s18 }
  0x1f   :  { %p2257_p0 = por %p2256_p13, %p2255_p12 }
  0x21   :  { %p2258_p1 = pnand %p2257_p0, %p2251_p11 }
  0x23   :  { %2261 = shalt.err (!%p2258_p1)
}
  0x24   :  { %67 = dma.hbm_to_vmem [thread:$0]  %s2788_s3, 512, %s2449_s16, [#allocation9], %s2384_s25, %s2384_s25, %s2385_s26  }
  0x25   :  { %s2386_s19 = smov [#allocation2]   ;;  %s2387_s21 = smov [#allocation7]  }
  0x26   :  { %s25_s20 = sshll.u32 %s2386_s19, 4  ;;  %s49_s22 = sshll.u32 %s2387_s21, 4  ;;  %s26_s20 = int_to_ptr.vmem [resolvable:$true] %s25_s20  ;;  %s2486_s22 = int_to_ptr.vmem [resolvable:$true] %s49_s22 }
  0x27   :  { %s2262_s27 = scalar_lea.hbm %s2785_s0, 512 }
  0x28   :  { %p2263_p2 = scmp.ne.s32.totalorder %s2785_s0, %s2262_s27  ;;  %p2266_p3 = scmp.lt.u32.totalorder %s2262_s27, %s2785_s0 }
  0x2a   :  { %p2268_p4 = pnand %p2266_p3, %p2263_p2 }
  0x2c   :  { %2271 = shalt.err (!%p2268_p4)
}
  0x2d   :  { %s2272_s3 = scalar_lea.vmem %s26_s20, 512  ;;  %p2277_p6 = scmp.lt.s32.totalorder %s26_s20, %s26_s20 }
  0x2e   :  { %p2273_p5 = scmp.ne.s32.totalorder %s26_s20, %s2272_s3  ;;  %p2278_p7 = scmp.lt.s32.totalorder %s2272_s3, %s2272_s3 }
  0x30   :  { %p2279_p8 = por %p2278_p7, %p2277_p6 }
  0x32   :  { %p2280_p9 = pnand %p2279_p8, %p2273_p5 }
  0x34   :  { %2283 = shalt.err (!%p2280_p9)
}
  0x35   :  { %31 = dma.hbm_to_vmem [thread:$0]  %s2785_s0, 512, %s26_s20, [#allocation3], %s2384_s25, %s2384_s25, %s2385_s26  }
  0x36   :  { %s2284_s17 = scalar_lea.hbm %s2787_s2, 3072 }
  0x37   :  { %p2285_p10 = scmp.ne.s32.totalorder %s2787_s2, %s2284_s17  ;;  %p2288_p11 = scmp.lt.u32.totalorder %s2284_s17, %s2787_s2 }
  0x39   :  { %p2290_p12 = pnand %p2288_p11, %p2285_p10 }
  0x3b   :  { %2293 = shalt.err (!%p2290_p12)
}
  0x3c   :  { %s2294_s21 = scalar_lea.vmem %s2486_s22, 3072  ;;  %p2299_p0 = scmp.lt.s32.totalorder %s2486_s22, %s2486_s22 }
  0x3d   :  { %p2295_p13 = scmp.ne.s32.totalorder %s2486_s22, %s2294_s21  ;;  %p2300_p1 = scmp.lt.s32.totalorder %s2294_s21, %s2294_s21 }
  0x3f   :  { %p2301_p2 = por %p2300_p1, %p2299_p0 }
  0x41   :  { %p2302_p3 = pnand %p2301_p2, %p2295_p13 }
  0x43   :  { %2305 = shalt.err (!%p2302_p3)
}
  0x44   :  { %55 = dma.hbm_to_vmem [thread:$0]  %s2787_s2, 3072, %s2486_s22, [#allocation6], %s2384_s25, %s2384_s25, %s2385_s26  }
  0x45   :  { %s2388_s23 = smov [#allocation10]   ;;  %s2389_s27 = smov [#allocation11]  }
  0x46   :  { %s73_s24 = sshll.u32 %s2388_s23, 4  ;;  %s85_s28 = sshll.u32 %s2389_s27, 4  ;;  %s74_s24 = int_to_ptr.vmem [resolvable:$true] %s73_s24  ;;  %s2523_s28 = int_to_ptr.vmem [resolvable:$true] %s85_s28 }
  0x47   :  { %s2306_s11 = scalar_lea.hbm %s2789_s4, 512 }
  0x48   :  { %p2307_p4 = scmp.ne.s32.totalorder %s2789_s4, %s2306_s11  ;;  %p2310_p5 = scmp.lt.u32.totalorder %s2306_s11, %s2789_s4 }
  0x4a   :  { %p2312_p6 = pnand %p2310_p5, %p2307_p4 }
  0x4c   :  { %2315 = shalt.err (!%p2312_p6)
}
  0x4d   :  { %s2316_s2 = scalar_lea.vmem %s74_s24, 512  ;;  %p2321_p8 = scmp.lt.s32.totalorder %s74_s24, %s74_s24 }
  0x4e   :  { %p2317_p7 = scmp.ne.s32.totalorder %s74_s24, %s2316_s2  ;;  %p2322_p9 = scmp.lt.s32.totalorder %s2316_s2, %s2316_s2 }
  0x50   :  { %p2323_p10 = por %p2322_p9, %p2321_p8 }
  0x52   :  { %p2324_p11 = pnand %p2323_p10, %p2317_p7 }
  0x54   :  { %2327 = shalt.err (!%p2324_p11)
}
  0x55   :  { %79 = dma.hbm_to_vmem [thread:$0]  %s2789_s4, 512, %s74_s24, [#allocation9], %s2384_s25, %s2384_s25, %s2385_s26  }
  0x56   :  { %s2328_s1 = scalar_lea.hbm %s2790_s5, 1024 }
  0x57   :  { %p2329_p12 = scmp.ne.s32.totalorder %s2790_s5, %s2328_s1  ;;  %p2332_p13 = scmp.lt.u32.totalorder %s2328_s1, %s2790_s5 }
  0x59   :  { %p2334_p0 = pnand %p2332_p13, %p2329_p12 }
  0x5b   :  { %2337 = shalt.err (!%p2334_p0)
}
  0x5c   :  { %s2338_s20 = scalar_lea.vmem %s2523_s28, 1024  ;;  %p2343_p2 = scmp.lt.s32.totalorder %s2523_s28, %s2523_s28 }
  0x5d   :  { %p2339_p1 = scmp.ne.s32.totalorder %s2523_s28, %s2338_s20  ;;  %p2344_p3 = scmp.lt.s32.totalorder %s2338_s20, %s2338_s20 }
  0x5f   :  { %p2345_p4 = por %p2344_p3, %p2343_p2 }
  0x61   :  { %p2346_p5 = pnand %p2345_p4, %p2339_p1 }
  0x63   :  { %2349 = shalt.err (!%p2346_p5)
}
  0x64   :  { %91 = dma.hbm_to_vmem [thread:$0]  %s2790_s5, 1024, %s2523_s28, [#allocation12], %s2384_s25, %s2384_s25, %s2385_s26  }
  0x65   :  { %2372 = dma.done.wait [#allocation3], 512  }
  0x66   :  { %2373 = vsyncadd [#allocation3], 4294966784 }
  0x67   :  { %2374 = dma.done.wait [#allocation6], 6144  }
  0x68   :  { %2375 = vsyncadd [#allocation6], 4294961152 }
  0x69   :  { %2376 = dma.done.wait [#allocation9], 1024  }
  0x6a   :  { %2377 = vsyncadd [#allocation9], 4294966272 }
  0x6b   :  { %2378 = dma.done.wait [#allocation12], 1024  }
  0x6c   :  { %2379 = vsyncadd [#allocation12], 4294966272  ;;  %v140_v0 = vld [vmem:[#allocation5] sm:$0xff]  ;;  %v141_v1 = vld [vmem:[#allocation5 + $0x8] sm:$0xff]  ;;  %vm148_vm0 = vcmask 523264   ;;  %vm434_vm1 = vcmask 261120  }
  0x6d   :  { %v142_v2 = vld [vmem:[#allocation5 + $0x10] sm:$0xff]  ;;  %v2010_v3 = vpack.c.bf16 %v141_v1, %v140_v0  ;;  %v143_v4 = vld [vmem:[#allocation5 + $0x18] sm:$0xff]  ;;  %v144_v6 = vld [vmem:[#allocation5 + $0x20] sm:$0xff]  ;;  %v2390_v63 = vmov 0.0|0.0   ;;  %vm2391_vm2 = vmmov 0  }
  0x6e   :  { %v2014_v5 = vpack.c.bf16 %v143_v4, %v142_v2  ;;  %v145_v7 = vld [vmem:[#allocation5 + $0x28] sm:$0xff]  ;;  %v2560_v8 = vld [vmem:[#allocation2] sm:$0xff]  ;;  %v146_v10 = vld [vmem:[#allocation5 + $0x30] sm:$0xff] }
  0x6f   :  { %2011 = vmatprep.subr.bf16.mxu0 %v2010_v3  ;;  %1762 = vmatprep.mubr.msk.f32.mxu0 %vm148_vm0, %v2560_v8  ;;  %v2018_v9 = vpack.c.bf16 %v145_v7, %v144_v6  ;;  %v147_v11 = vld [vmem:[#allocation5 + $0x38] sm:$0xff]  ;;  %v247_v12 = vld [vmem:[#allocation5 + $0x40] sm:$0xff]  ;;  %v248_v13 = vld [vmem:[#allocation5 + $0x48] sm:$0xff] }
  0x70   :  { %2013 = vmatpush3.bf16.msra.mxu0 %v2010_v3  ;;  %1784 = vmatprep.mubr.msk.f32.mxu1 %vm148_vm0, %v2560_v8  ;;  %v249_v14 = vld [vmem:[#allocation5 + $0x50] sm:$0xff]  ;;  %v250_v15 = vld [vmem:[#allocation5 + $0x58] sm:$0xff]  ;;  %v2026_v16 = vpack.c.bf16 %v248_v13, %v247_v12  ;;  %v2022_v18 = vpack.c.bf16 %v147_v11, %v146_v10  ;;  %v251_v19 = vld [vmem:[#allocation5 + $0x60] sm:$0xff]  ;;  %v2392_v10 = vmov 0.0  }
  0x71   :  { %2015 = vmatprep.subr.bf16.mxu0 %v2014_v5  ;;  %v2030_v17 = vpack.c.bf16 %v250_v15, %v249_v14  ;;  %v252_v20 = vld [vmem:[#allocation5 + $0x68] sm:$0xff]  ;;  %v341_v21 = vld [vmem:[#allocation5 + $0x80] sm:$0xff]  ;;  %v343_v25 = vld [vmem:[#allocation5 + $0x90] sm:$0xff] }
  0x72   :  { %v342_v22 = vld [vmem:[#allocation5 + $0x88] sm:$0xff]  ;;  %2027 = vmatprep.subr.bf16.mxu1 %v2026_v16  ;;  %v2034_v23 = vpack.c.bf16 %v252_v20, %v251_v19  ;;  %v344_v26 = vld [vmem:[#allocation5 + $0x98] sm:$0xff]  ;;  %v2568_v29 = vld [vmem:[#allocation2 + $0x10] sm:$0xff] }
  0x73   :  { %2029 = vmatpush3.bf16.msra.mxu1 %v2026_v16  ;;  %v2042_v24 = vpack.c.bf16 %v342_v22, %v341_v21  ;;  %v2566_v27 = vld [vmem:[#allocation2 + $0x8] sm:$0xff]  ;;  %v2046_v28 = vpack.c.bf16 %v344_v26, %v343_v25  ;;  %v345_v30 = vld [vmem:[#allocation5 + $0xa0] sm:$0xff]  ;;  %v2574_v32 = vld [vmem:[#allocation2 + $0x18] sm:$0xff] }
  0x74   :  { %2017 = vmatpush3.bf16.msra.mxu0 %v2014_v5  ;;  %2031 = vmatprep.subr.bf16.mxu1 %v2030_v17  ;;  %v346_v31 = vld [vmem:[#allocation5 + $0xa8] sm:$0xff]  ;;  %v347_v34 = vld [vmem:[#allocation5 + $0xb0] sm:$0xff]  ;;  %v348_v35 = vld [vmem:[#allocation5 + $0xb8] sm:$0xff] }
  0x75   :  { %2019 = vmatprep.subr.bf16.mxu0 %v2018_v9  ;;  %v2050_v33 = vpack.c.bf16 %v346_v31, %v345_v30  ;;  %v2054_v36 = vpack.c.bf16 %v348_v35, %v347_v34  ;;  %v253_v37 = vld [vmem:[#allocation5 + $0x70] sm:$0xff]  ;;  %v254_v38 = vld [vmem:[#allocation5 + $0x78] sm:$0xff]  ;;  %v2592_v40 = vld [vmem:[#allocation8] sm:$0xff] }
  0x76   :  { %v2038_v39 = vpack.c.bf16 %v254_v38, %v253_v37  ;;  %v2596_v47 = vld [vmem:[#allocation8 + $0x8] sm:$0xff]  ;;  %v2598_v48 = vld [vmem:[#allocation8 + $0x10] sm:$0xff]  ;;  %v2604_v49 = vld [vmem:[#allocation8 + $0x18] sm:$0xff] }
  0x77   :  { %2033 = vmatpush3.bf16.msra.mxu1 %v2030_v17  ;;  %v2606_v50 = vld [vmem:[#allocation10] sm:$0xff]  ;;  %v2612_v57 = vld [vmem:[#allocation10 + $0x8] sm:$0xff]  ;;  %v2614_v58 = vld [vmem:[#allocation10 + $0x10] sm:$0xff] }
  0x78   :  { %2021 = vmatpush3.bf16.msra.mxu0 %v2018_v9  ;;  %2035 = vmatprep.subr.bf16.mxu1 %v2034_v23  ;;  %v2620_v59 = vld [vmem:[#allocation10 + $0x18] sm:$0xff]  ;;  %v130_v60 = vld [vmem:[#allocation11] sm:$0xff]  ;;  %v131_v61 = vld [vmem:[#allocation11 + $0x8] sm:$0xff] }
  0x79   :  { %2023 = vmatprep.subr.bf16.mxu0 %v2022_v18  ;;  %v2624_v62 = vpack.c.bf16 %v131_v61, %v130_v60  ;;  %v132_v0 = vld [vmem:[#allocation11 + $0x10] sm:$0xff]  ;;  %v133_v1 = vld [vmem:[#allocation11 + $0x18] sm:$0xff]  ;;  %v134_v3 = vld [vmem:[#allocation11 + $0x20] sm:$0xff] }
  0x7a   :  { %v2632_v2 = vpack.c.bf16 %v133_v1, %v132_v0  ;;  %v135_v4 = vld [vmem:[#allocation11 + $0x28] sm:$0xff]  ;;  %v136_v6 = vld [vmem:[#allocation11 + $0x30] sm:$0xff]  ;;  %v137_v7 = vld [vmem:[#allocation11 + $0x38] sm:$0xff] }
  0x7b   :  { %2037 = vmatpush3.bf16.msra.mxu1 %v2034_v23  ;;  %v2638_v5 = vpack.c.bf16 %v135_v4, %v134_v3  ;;  %v2644_v9 = vpack.c.bf16 %v137_v7, %v136_v6  ;;  %v955_v60 = vld [vmem:[#allocation7 + $0x48] sm:$0xff]  ;;  %v850_v0 = vld [vmem:[#allocation7 + $0x10] sm:$0xff]  ;;  %v851_v1 = vld [vmem:[#allocation7 + $0x18] sm:$0xff] }
  0x7c   :  { %2025 = vmatpush3.bf16.msra.mxu0 %v2022_v18  ;;  %2039 = vmatprep.subr.bf16.mxu1 %v2038_v39  ;;  %v2102_v3 = vpack.c.bf16 %v851_v1, %v850_v0  ;;  %v956_v4 = vld [vmem:[#allocation7 + $0x50] sm:$0xff]  ;;  %v957_v6 = vld [vmem:[#allocation7 + $0x58] sm:$0xff] }
  0x7d   :  { %2043 = vmatprep.subr.bf16.mxu0 %v2042_v24  ;;  %v2118_v7 = vpack.c.bf16 %v957_v6, %v956_v4  ;;  %v1050_v6 = vld [vmem:[#allocation7 + $0x90] sm:$0xff] }
  0x7f   :  { %1763 = vmatmul.mubr.msk.f32.vlgmr.msra.gmra.mrb[0].mxu0 %vm148_vm0, %v2566_v27  ;;  %2041 = vmatpush3.bf16.msra.mxu1 %v2038_v39 }
  0x80   :  { %2045 = vmatpush3.bf16.msra.mxu0 %v2042_v24  ;;  %1765 = vmatprep.mubr.msk.f32.mxu0 %vm148_vm0, %v2568_v29 }
  0x81   :  { %2047 = vmatprep.subr.bf16.mxu0 %v2046_v28 }
  0x82   :  { %1785 = vmatmul.mubr.msk.f32.vlgmr.msra.gmra.mrb[0].mxu1 %vm148_vm0, %v2566_v27 }
  0x83   :  { %1766 = vmatmul.mubr.msk.f32.gmra.mrb[2].mxu0 %vm148_vm0, %v2574_v32  ;;  %1787 = vmatprep.mubr.msk.f32.mxu1 %vm148_vm0, %v2568_v29 }
  0x84   :  { %2049 = vmatpush3.bf16.msra.mxu0 %v2046_v28  ;;  %1806 = vmatprep.mubr.msk.f32.mxu0 %vm148_vm0, %v2560_v8 }
  0x85   :  { %2051 = vmatprep.subr.bf16.mxu0 %v2050_v33 }
  0x86   :  { %1788 = vmatmul.mubr.msk.f32.gmra.mrb[2].mxu1 %vm148_vm0, %v2574_v32 }
  0x87   :  { %1820 = vmatprep.mubr.msk.f32.mxu1 %vm434_vm1, %v2592_v40 }
  0x88   :  { %2053 = vmatpush3.bf16.msra.mxu0 %v2050_v33 }
  0x89   :  { %2055 = vmatprep.subr.bf16.mxu0 %v2054_v36 }
  0x8c   :  { %2057 = vmatpush3.bf16.msra.mxu0 %v2054_v36 }
  0x8d   :  { %2074 = vmatprep.subr.bf16.mxu0 %v2390_v63 }
  0x8f   :  { %1807 = vmatmul.mubr.msk.f32.vlgmr.msra.gmra.mrb[4].mxu0 %vm148_vm0, %v2566_v27 }
  0x90   :  { %1809 = vmatprep.mubr.msk.f32.mxu0 %vm148_vm0, %v2568_v29  ;;  %2076 = vmatpush3.bf16.msra.mxu0 %v2624_v62 }
  0x91   :  { %2077 = vmatprep.subr.bf16.mxu0 %v2390_v63 }
  0x93   :  { %1810 = vmatmul.mubr.msk.f32.gmra.mrb[6].mxu0 %vm148_vm0, %v2574_v32 }
  0x94   :  { %2079 = vmatpush3.bf16.msra.mxu0 %v2632_v2  ;;  %1856 = vmatprep.mubr.msk.f32.mxu0 %vm2391_vm2, %v2392_v10 }
  0x95   :  { %2080 = vmatprep.subr.bf16.mxu0 %v2390_v63 }
  0x98   :  { %2082 = vmatpush3.bf16.msra.mxu0 %v2638_v5 }
  0x99   :  { %2083 = vmatprep.subr.bf16.mxu0 %v2390_v63 }
  0x9c   :  { %2085 = vmatpush3.bf16.msra.mxu0 %v2644_v9 }
 0x152   :  { %v1764_v41 = vpop.f32.mrb[0].mxu0 }
 0x153   :  { %v227_v42 = vpop.f32.mrb[1].mxu0 }
 0x154   :  { %v2058_v43 = vpack.c.bf16 %v1764_v41, %v227_v42 }
 0x156   :  { %2059 = vmatprep.subr.bf16.mxu1 %v2058_v43  ;;  %v1767_v44 = vpop.f32.mrb[2].mxu0 }
 0x157   :  { %2061 = vmatpush3.bf16.msra.mxu1 %v2058_v43  ;;  %v237_v45 = vpop.f32.mrb[3].mxu0 }
 0x158   :  { %v2062_v46 = vpack.c.bf16 %v1767_v44, %v237_v45 }
 0x15a   :  { %2063 = vmatprep.subr.bf16.mxu1 %v2062_v46 }
 0x15b   :  { %2065 = vmatpush3.bf16.msra.mxu1 %v2062_v46 }
 0x15e   :  { %1821 = vmatmul.mubr.msk.f32.vlgmr.msra.gmra.mrb[0].mxu1 %vm434_vm1, %v2596_v47 }
 0x15f   :  { %1823 = vmatprep.mubr.msk.f32.mxu1 %vm434_vm1, %v2598_v48 }
 0x162   :  { %v1808_v51 = vpop.f32.mrb[4].mxu0  ;;  %1824 = vmatmul.mubr.msk.f32.gmra.mrb[2].mxu1 %vm434_vm1, %v2604_v49 }
 0x163   :  { %v415_v52 = vpop.f32.mrb[5].mxu0  ;;  %1834 = vmatprep.mubr.msk.f32.mxu1 %vm434_vm1, %v2606_v50 }
 0x164   :  { %v2066_v53 = vpack.c.bf16 %v1808_v51, %v415_v52 }
 0x166   :  { %v1811_v54 = vpop.f32.mrb[6].mxu0  ;;  %2067 = vmatprep.subr.bf16.mxu1 %v2066_v53 }
 0x167   :  { %v425_v55 = vpop.f32.mrb[7].mxu0  ;;  %2069 = vmatpush3.bf16.msra.mxu1 %v2066_v53  ;;  %v848_v53 = vld [vmem:[#allocation7] sm:$0xff] }
 0x168   :  { %v2070_v56 = vpack.c.bf16 %v1811_v54, %v425_v55  ;;  %v849_v54 = vld [vmem:[#allocation7 + $0x8] sm:$0xff] }
 0x169   :  { %v2098_v55 = vpack.c.bf16 %v849_v54, %v848_v53 }
 0x16a   :  { %2071 = vmatprep.subr.bf16.mxu1 %v2070_v56 }
 0x16b   :  { %2073 = vmatpush3.bf16.msra.mxu1 %v2070_v56  ;;  %v954_v56 = vld [vmem:[#allocation7 + $0x40] sm:$0xff]  ;;  %2099 = vmatprep.subr.bf16.mxu0 %v2098_v55 }
 0x16c   :  { %2086 = vmatprep.subr.bf16.mxu1 %v2390_v63  ;;  %v2114_v61 = vpack.c.bf16 %v955_v60, %v954_v56 }
 0x16e   :  { %1835 = vmatmul.mubr.msk.f32.vlgmr.msra.gmra.mrb[0].mxu1 %vm434_vm1, %v2612_v57 }
 0x16f   :  { %1837 = vmatprep.mubr.msk.f32.mxu1 %vm434_vm1, %v2614_v58  ;;  %2088 = vmatpush3.bf16.msra.mxu1 %v2624_v62 }
 0x170   :  { %2089 = vmatprep.subr.bf16.mxu1 %v2390_v63 }
 0x172   :  { %1838 = vmatmul.mubr.msk.f32.gmra.mrb[2].mxu1 %vm434_vm1, %v2620_v59 }
 0x173   :  { %2091 = vmatpush3.bf16.msra.mxu1 %v2632_v2  ;;  %1875 = vmatprep.mubr.msk.f32.mxu1 %vm2391_vm2, %v2392_v10 }
 0x174   :  { %2092 = vmatprep.subr.bf16.mxu1 %v2390_v63 }
 0x177   :  { %2094 = vmatpush3.bf16.msra.mxu1 %v2638_v5 }
 0x178   :  { %2095 = vmatprep.subr.bf16.mxu1 %v2390_v63 }
 0x17b   :  { %2097 = vmatpush3.bf16.msra.mxu1 %v2644_v9 }
 0x17c   :  { %2115 = vmatprep.subr.bf16.mxu1 %v2114_v61 }
 0x241   :  { %v2652_v11 = vpop.f32.mrb[0].mxu1 }
 0x242   :  { %v634_v12 = vsel %vm148_vm0, %v2652_v11, 0.0  ;;  %v647_v13 = vmul.f32 %v2652_v11, %v2652_v11  ;;  %v2658_v14 = vpop.f32.mrb[1].mxu1 }
 0x243   :  { %v633_v15 = vsel %vm148_vm0, %v2658_v14, 0.0  ;;  %v646_v16 = vmul.f32 %v2658_v14, %v2658_v14 }
 0x244   :  { %v651_v17 = vsel %vm148_vm0, %v647_v13, 0.0  ;;  %v635_v18 = vadd.f32 %v634_v12, %v633_v15  ;;  %v852_v12 = vld [vmem:[#allocation7 + $0x20] sm:$0xff]  ;;  %v853_v13 = vld [vmem:[#allocation7 + $0x28] sm:$0xff] }
 0x245   :  { %v650_v19 = vsel %vm148_vm0, %v646_v16, 0.0  ;;  %v2666_v20 = vpop.f32.mrb[2].mxu1  ;;  %v2106_v15 = vpack.c.bf16 %v853_v13, %v852_v12  ;;  %v958_v16 = vld [vmem:[#allocation7 + $0x60] sm:$0xff] }
 0x246   :  { %v652_v21 = vadd.f32 %v651_v17, %v650_v19  ;;  %v2668_v22 = vpop.f32.mrb[3].mxu1  ;;  %v649_v23 = vmul.f32 %v2666_v20, %v2666_v20  ;;  %v638_v28 = vsel %vm148_vm0, %v2666_v20, 0.0  ;;  %v959_v17 = vld [vmem:[#allocation7 + $0x68] sm:$0xff]  ;;  %v854_v19 = vld [vmem:[#allocation7 + $0x30] sm:$0xff] }
 0x247   :  { %v636_v24 = vsel %vm148_vm0, %v2668_v22, 0.0  ;;  %v648_v25 = vmul.f32 %v2668_v22, %v2668_v22 }
 0x248   :  { %v637_v26 = vadd.f32 %v636_v24, %v635_v18  ;;  %v655_v34 = vsel %vm148_vm0, %v649_v23, 0.0  ;;  %v2122_v18 = vpack.c.bf16 %v959_v17, %v958_v16  ;;  %v960_v23 = vld [vmem:[#allocation7 + $0x70] sm:$0xff] }
 0x249   :  { %v653_v30 = vsel %vm148_vm0, %v648_v25, 0.0  ;;  %v961_v25 = vld [vmem:[#allocation7 + $0x78] sm:$0xff] }
 0x24a   :  { %v639_v31 = vadd.f32 %v638_v28, %v637_v26  ;;  %v654_v33 = vadd.f32 %v653_v30, %v652_v21  ;;  %v855_v21 = vld [vmem:[#allocation7 + $0x38] sm:$0xff]  ;;  %v2126_v26 = vpack.c.bf16 %v961_v25, %v960_v23  ;;  %v1048_v28 = vld [vmem:[#allocation7 + $0x80] sm:$0xff]  ;;  %v1049_v30 = vld [vmem:[#allocation7 + $0x88] sm:$0xff] }
 0x24b   :  { %v2110_v24 = vpack.c.bf16 %v855_v21, %v854_v19  ;;  %v1053_v19 = vld [vmem:[#allocation7 + $0xa8] sm:$0xff]  ;;  %v1055_v25 = vld [vmem:[#allocation7 + $0xb8] sm:$0xff] }
 0x24c   :  { %v640_v35 = vrot.slane %v639_v31, 4  ;;  %v656_v36 = vadd.f32 %v655_v34, %v654_v33  ;;  %v813_v33 = vlaneseq }
 0x24e   :  { %v641_v37 = vadd.f32 %v640_v35, %v639_v31  ;;  %v657_v38 = vrot.slane %v656_v36, 4  ;;  %v2130_v31 = vpack.c.bf16 %v1049_v30, %v1048_v28  ;;  %v814_v34 = vshrl.u32 %v813_v33, 7 }
 0x250   :  { %v642_v39 = vrot.slane %v641_v37, 2  ;;  %v658_v41 = vadd.f32 %v657_v38, %v656_v36  ;;  %v2682_v35 = vsub.s32 0, %v814_v34 }
 0x252   :  { %v643_v42 = vadd.f32 %v642_v39, %v641_v37  ;;  %v659_v43 = vrot.slane %v658_v41, 2 }
 0x254   :  { %v644_v44 = vrot.slane %v643_v42, 1  ;;  %v660_v45 = vadd.f32 %v659_v43, %v658_v41 }
 0x256   :  { %v645_v46 = vadd.f32 %v644_v44, %v643_v42  ;;  %v661_v51 = vrot.slane %v660_v45, 1 }
 0x258   :  { %v662_v52 = vadd.f32 %v661_v51, %v660_v45  ;;  %1857 = vmatmul.mubr.msk.f32.vlgmr.msra.gmra.mrb[8].mxu0 %vm148_vm0, %v645_v46 }
 0x259   :  { %2101 = vmatpush3.bf16.msra.mxu0 %v2098_v55  ;;  %v138_v55 = vld [vmem:[%s2791_s6] sm:$0x1] }
 0x25a   :  { %1876 = vmatmul.mubr.msk.f32.vlgmr.msra.gmra.mrb[4].mxu1 %vm148_vm0, %v662_v52  ;;  %2103 = vmatprep.subr.bf16.mxu0 %v2102_v3 }
 0x25b   :  { %2117 = vmatpush3.bf16.msra.mxu1 %v2114_v61 }
 0x25c   :  { %2119 = vmatprep.subr.bf16.mxu1 %v2118_v7 }
 0x25d   :  { %2105 = vmatpush3.bf16.msra.mxu0 %v2102_v3 }
 0x25e   :  { %2107 = vmatprep.subr.bf16.mxu0 %v2106_v15 }
 0x25f   :  { %2121 = vmatpush3.bf16.msra.mxu1 %v2118_v7  ;;  %v1051_v7 = vld [vmem:[#allocation7 + $0x98] sm:$0xff] }
 0x260   :  { %2123 = vmatprep.subr.bf16.mxu1 %v2122_v18 }
 0x261   :  { %2109 = vmatpush3.bf16.msra.mxu0 %v2106_v15  ;;  %v2134_v15 = vpack.c.bf16 %v1051_v7, %v1050_v6 }
 0x262   :  { %2111 = vmatprep.subr.bf16.mxu0 %v2110_v24 }
 0x263   :  { %2125 = vmatpush3.bf16.msra.mxu1 %v2122_v18  ;;  %v1052_v18 = vld [vmem:[#allocation7 + $0xa0] sm:$0xff] }
 0x264   :  { %2127 = vmatprep.subr.bf16.mxu1 %v2126_v26  ;;  %v2138_v23 = vpack.c.bf16 %v1053_v19, %v1052_v18 }
 0x265   :  { %2113 = vmatpush3.bf16.msra.mxu0 %v2110_v24  ;;  %v1054_v24 = vld [vmem:[#allocation7 + $0xb0] sm:$0xff] }
 0x266   :  { %2131 = vmatprep.subr.bf16.mxu0 %v2130_v31 }
 0x267   :  { %2129 = vmatpush3.bf16.msra.mxu1 %v2126_v26  ;;  %v2142_v26 = vpack.c.bf16 %v1055_v25, %v1054_v24 }
 0x32b   :  { %v732_v36 = vpop.f32.mrb[8].mxu0 }
 0x32c   :  { %v736_v37 = vmul.f32 0.001953125, %v732_v36  ;;  %v1858_v38 = vpop.f32.mrb[9].mxu0 }
 0x32d   :  { %v806_v39 = vpop.f32.mrb[4].mxu1 }
 0x32e   :  { %v811_v41 = vmul.f32 %v736_v37, %v736_v37  ;;  %v816_v42 = vrot.slane %v736_v37, %v2682_v35  ;;  %v810_v43 = vmul.f32 0.001953125, %v806_v39  ;;  %v1877_v44 = vpop.f32.mrb[5].mxu1 }
 0x330   :  { %v817_v45 = vsub.f32 %v2658_v14, %v816_v42  ;;  %v818_v46 = vsub.f32 %v2652_v11, %v816_v42  ;;  %v819_v51 = vsub.f32 %v2668_v22, %v816_v42  ;;  %v820_v52 = vsub.f32 %v2666_v20, %v816_v42  ;;  %v1582_v14 = vld [vmem:[%s2792_s7] ss:$0 sm:$0xff] }
 0x331   :  { %v812_v53 = vsub.f32 %v810_v43, %v811_v41 }
 0x333   :  { %v821_v54 = vadd.f32 1e-05, %v812_v53 }
 0x335   :  { %2214 = vrsqrt.f32 %v821_v54 }
 0x33f   :  { %v2215_v56 = vpop.eup %2214 }
 0x340   :  { %v823_v60 = vmul.f32 %v2215_v56, %v138_v55 }
 0x342   :  { %v827_v61 = vrot.slane %v823_v60, %v2682_v35 }
 0x344   :  { %v828_v11 = vmul.f32 %v827_v61, %v817_v45  ;;  %v829_v0 = vmul.f32 %v827_v61, %v818_v46  ;;  %v830_v22 = vmul.f32 %v827_v61, %v819_v51  ;;  %v831_v1 = vmul.f32 %v827_v61, %v820_v52 }
 0x346   :  { %v838_v20 = vadd.f32 %v1582_v14, %v828_v11  ;;  %v839_v3 = vadd.f32 %v1582_v14, %v829_v0  ;;  %v840_v4 = vadd.f32 %v1582_v14, %v830_v22  ;;  %v841_v16 = vadd.f32 %v1582_v14, %v831_v1 }
 0x348   :  { %v842_v12 = vmax.f32 %v838_v20, 0.0  ;;  %v843_v13 = vmax.f32 %v839_v3, 0.0  ;;  %v844_v17 = vmax.f32 %v840_v4, 0.0  ;;  %v845_v21 = vmax.f32 %v841_v16, 0.0 }
 0x34a   :  { %1894 = vmatprep.mubr.msk.f32.mxu0 %vm148_vm0, %v842_v12  ;;  %1916 = vmatprep.mubr.msk.f32.mxu1 %vm148_vm0, %v842_v12 }
 0x34b   :  { %1895 = vmatmul.mubr.msk.f32.vlgmr.msra.gmra.mrb[10].mxu0 %vm148_vm0, %v843_v13  ;;  %1917 = vmatmul.mubr.msk.f32.vlgmr.msra.gmra.mrb[6].mxu1 %vm148_vm0, %v843_v13 }
 0x34c   :  { %2133 = vmatpush3.bf16.msra.mxu0 %v2130_v31  ;;  %1897 = vmatprep.mubr.msk.f32.mxu0 %vm148_vm0, %v844_v17 }
 0x34d   :  { %1919 = vmatprep.mubr.msk.f32.mxu1 %vm148_vm0, %v844_v17  ;;  %2135 = vmatprep.subr.bf16.mxu0 %v2134_v15 }
 0x34f   :  { %1898 = vmatmul.mubr.msk.f32.gmra.mrb[12].mxu0 %vm148_vm0, %v845_v21  ;;  %1920 = vmatmul.mubr.msk.f32.gmra.mrb[8].mxu1 %vm148_vm0, %v845_v21 }
 0x350   :  { %2137 = vmatpush3.bf16.msra.mxu0 %v2134_v15  ;;  %1938 = vmatprep.mubr.msk.f32.mxu0 %vm148_vm0, %v842_v12 }
 0x351   :  { %2139 = vmatprep.subr.bf16.mxu0 %v2138_v23  ;;  %1952 = vmatprep.mubr.msk.f32.mxu1 %vm434_vm1, %v2592_v40 }
 0x354   :  { %2141 = vmatpush3.bf16.msra.mxu0 %v2138_v23 }
 0x355   :  { %2143 = vmatprep.subr.bf16.mxu0 %v2142_v26 }
 0x358   :  { %2145 = vmatpush3.bf16.msra.mxu0 %v2142_v26 }
 0x359   :  { %2162 = vmatprep.subr.bf16.mxu0 %v2390_v63 }
 0x35b   :  { %1939 = vmatmul.mubr.msk.f32.vlgmr.msra.gmra.mrb[14].mxu0 %vm148_vm0, %v843_v13 }
 0x35c   :  { %1941 = vmatprep.mubr.msk.f32.mxu0 %vm148_vm0, %v844_v17  ;;  %2164 = vmatpush3.bf16.msra.mxu0 %v2624_v62 }
 0x35d   :  { %2165 = vmatprep.subr.bf16.mxu0 %v2390_v63 }
 0x35f   :  { %1942 = vmatmul.mubr.msk.f32.gmra.mrb[16].mxu0 %vm148_vm0, %v845_v21 }
 0x360   :  { %2167 = vmatpush3.bf16.msra.mxu0 %v2632_v2  ;;  %1988 = vmatprep.mubr.msk.f32.mxu0 %vm2391_vm2, %v2392_v10 }
 0x361   :  { %2168 = vmatprep.subr.bf16.mxu0 %v2390_v63 }
 0x364   :  { %2170 = vmatpush3.bf16.msra.mxu0 %v2638_v5 }
 0x365   :  { %2171 = vmatprep.subr.bf16.mxu0 %v2390_v63 }
 0x368   :  { %2173 = vmatpush3.bf16.msra.mxu0 %v2644_v9 }
 0x41e   :  { %v1896_v40 = vpop.f32.mrb[10].mxu0 }
 0x41f   :  { %v934_v28 = vpop.f32.mrb[11].mxu0 }
 0x420   :  { %v2146_v30 = vpack.c.bf16 %v1896_v40, %v934_v28  ;;  %v846_v28 = vld [vmem:[%s2793_s8] sm:$0x1]  ;;  %s2393_s8 = smov [#allocation13]  }
 0x421   :  { %s1545_s11 = sshll.u32 %s2393_s8, 4  ;;  %s1546_s11 = int_to_ptr.vmem [resolvable:$true] %s1545_s11 }
 0x422   :  { %v1899_v31 = vpop.f32.mrb[12].mxu0  ;;  %2147 = vmatprep.subr.bf16.mxu1 %v2146_v30  ;;  %p2355_p7 = scmp.lt.s32.totalorder %s1546_s11, %s1546_s11 }
 0x423   :  { %v944_v33 = vpop.f32.mrb[13].mxu0  ;;  %2149 = vmatpush3.bf16.msra.mxu1 %v2146_v30 }
 0x424   :  { %v2150_v34 = vpack.c.bf16 %v1899_v31, %v944_v33 }
 0x426   :  { %2151 = vmatprep.subr.bf16.mxu1 %v2150_v34 }
 0x427   :  { %2153 = vmatpush3.bf16.msra.mxu1 %v2150_v34  ;;  %v1605_v34 = vld [vmem:[%s2794_s9] ss:$0 sm:$0xff]  ;;  %s2350_s9 = scalar_lea.vmem %s1546_s11, 512 }
 0x428   :  { %p2351_p6 = scmp.ne.s32.totalorder %s1546_s11, %s2350_s9  ;;  %p2356_p8 = scmp.lt.s32.totalorder %s2350_s9, %s2350_s9 }
 0x42a   :  { %1953 = vmatmul.mubr.msk.f32.vlgmr.msra.gmra.mrb[6].mxu1 %vm434_vm1, %v2596_v47  ;;  %p2357_p9 = por %p2356_p8, %p2355_p7 }
 0x42b   :  { %1955 = vmatprep.mubr.msk.f32.mxu1 %vm434_vm1, %v2598_v48 }
 0x42c   :  { %p2358_p10 = pnand %p2357_p9, %p2351_p6 }
 0x42e   :  { %v1940_v36 = vpop.f32.mrb[14].mxu0  ;;  %1956 = vmatmul.mubr.msk.f32.gmra.mrb[8].mxu1 %vm434_vm1, %v2604_v49 }
 0x42f   :  { %v1122_v37 = vpop.f32.mrb[15].mxu0  ;;  %1966 = vmatprep.mubr.msk.f32.mxu1 %vm434_vm1, %v2606_v50 }
 0x430   :  { %v2154_v38 = vpack.c.bf16 %v1940_v36, %v1122_v37 }
 0x432   :  { %v1943_v39 = vpop.f32.mrb[16].mxu0  ;;  %2155 = vmatprep.subr.bf16.mxu1 %v2154_v38 }
 0x433   :  { %v1132_v41 = vpop.f32.mrb[17].mxu0  ;;  %2157 = vmatpush3.bf16.msra.mxu1 %v2154_v38 }
 0x434   :  { %v2158_v42 = vpack.c.bf16 %v1943_v39, %v1132_v41 }
 0x436   :  { %2159 = vmatprep.subr.bf16.mxu1 %v2158_v42 }
 0x437   :  { %2161 = vmatpush3.bf16.msra.mxu1 %v2158_v42 }
 0x438   :  { %2174 = vmatprep.subr.bf16.mxu1 %v2390_v63 }
 0x43a   :  { %1967 = vmatmul.mubr.msk.f32.vlgmr.msra.gmra.mrb[6].mxu1 %vm434_vm1, %v2612_v57 }
 0x43b   :  { %1969 = vmatprep.mubr.msk.f32.mxu1 %vm434_vm1, %v2614_v58  ;;  %2176 = vmatpush3.bf16.msra.mxu1 %v2624_v62 }
 0x43c   :  { %2177 = vmatprep.subr.bf16.mxu1 %v2390_v63 }
 0x43e   :  { %1970 = vmatmul.mubr.msk.f32.gmra.mrb[8].mxu1 %vm434_vm1, %v2620_v59 }
 0x43f   :  { %2179 = vmatpush3.bf16.msra.mxu1 %v2632_v2  ;;  %2007 = vmatprep.mubr.msk.f32.mxu1 %vm2391_vm2, %v2392_v10 }
 0x440   :  { %2180 = vmatprep.subr.bf16.mxu1 %v2390_v63 }
 0x443   :  { %2182 = vmatpush3.bf16.msra.mxu1 %v2638_v5 }
 0x444   :  { %2183 = vmatprep.subr.bf16.mxu1 %v2390_v63 }
 0x447   :  { %2185 = vmatpush3.bf16.msra.mxu1 %v2644_v9 }
 0x50d   :  { %v1968_v47 = vpop.f32.mrb[6].mxu1 }
 0x50e   :  { %v1316_v48 = vsel %vm148_vm0, %v1968_v47, 0.0  ;;  %v1329_v49 = vmul.f32 %v1968_v47, %v1968_v47  ;;  %v1292_v50 = vpop.f32.mrb[7].mxu1 }
 0x50f   :  { %v1315_v57 = vsel %vm148_vm0, %v1292_v50, 0.0  ;;  %v1328_v58 = vmul.f32 %v1292_v50, %v1292_v50 }
 0x510   :  { %v1333_v59 = vsel %vm148_vm0, %v1329_v49, 0.0  ;;  %v1317_v62 = vadd.f32 %v1316_v48, %v1315_v57 }
 0x511   :  { %v1332_v2 = vsel %vm148_vm0, %v1328_v58, 0.0  ;;  %v1971_v10 = vpop.f32.mrb[8].mxu1 }
 0x512   :  { %v1334_v43 = vadd.f32 %v1333_v59, %v1332_v2  ;;  %v1302_v5 = vpop.f32.mrb[9].mxu1  ;;  %v1331_v44 = vmul.f32 %v1971_v10, %v1971_v10  ;;  %v1320_v46 = vsel %vm148_vm0, %v1971_v10, 0.0 }
 0x513   :  { %v1318_v63 = vsel %vm148_vm0, %v1302_v5, 0.0  ;;  %v1330_v9 = vmul.f32 %v1302_v5, %v1302_v5 }
 0x514   :  { %v1319_v45 = vadd.f32 %v1318_v63, %v1317_v62  ;;  %v1337_v54 = vsel %vm148_vm0, %v1331_v44, 0.0 }
 0x515   :  { %v1335_v51 = vsel %vm148_vm0, %v1330_v9, 0.0 }
 0x516   :  { %v1321_v52 = vadd.f32 %v1320_v46, %v1319_v45  ;;  %v1336_v53 = vadd.f32 %v1335_v51, %v1334_v43 }
 0x518   :  { %v1322_v55 = vrot.slane %v1321_v52, 4  ;;  %v1338_v56 = vadd.f32 %v1337_v54, %v1336_v53 }
 0x51a   :  { %v1323_v60 = vadd.f32 %v1322_v55, %v1321_v52  ;;  %v1339_v61 = vrot.slane %v1338_v56, 4 }
 0x51c   :  { %v1324_v14 = vrot.slane %v1323_v60, 2  ;;  %v1340_v11 = vadd.f32 %v1339_v61, %v1338_v56 }
 0x51e   :  { %v1325_v0 = vadd.f32 %v1324_v14, %v1323_v60  ;;  %v1341_v22 = vrot.slane %v1340_v11, 2 }
 0x520   :  { %v1326_v1 = vrot.slane %v1325_v0, 1  ;;  %v1342_v20 = vadd.f32 %v1341_v22, %v1340_v11 }
 0x522   :  { %v1327_v3 = vadd.f32 %v1326_v1, %v1325_v0  ;;  %v1343_v4 = vrot.slane %v1342_v20, 1 }
 0x524   :  { %v1344_v6 = vadd.f32 %v1343_v4, %v1342_v20  ;;  %1989 = vmatmul.mubr.msk.f32.vlgmr.msra.gmra.mrb[18].mxu0 %vm148_vm0, %v1327_v3 }
 0x526   :  { %2008 = vmatmul.mubr.msk.f32.vlgmr.msra.gmra.mrb[10].mxu1 %vm148_vm0, %v1344_v6 }
 0x5f7   :  { %v1414_v7 = vpop.f32.mrb[18].mxu0 }
 0x5f8   :  { %v1418_v12 = vmul.f32 0.001953125, %v1414_v7  ;;  %v1990_v13 = vpop.f32.mrb[19].mxu0 }
 0x5f9   :  { %v1488_v15 = vpop.f32.mrb[10].mxu1 }
 0x5fa   :  { %v1493_v16 = vmul.f32 %v1418_v12, %v1418_v12  ;;  %v1498_v17 = vrot.slane %v1418_v12, %v2682_v35  ;;  %v1492_v18 = vmul.f32 0.001953125, %v1488_v15  ;;  %v2009_v19 = vpop.f32.mrb[11].mxu1 }
 0x5fc   :  { %v1499_v21 = vsub.f32 %v1292_v50, %v1498_v17  ;;  %v1500_v23 = vsub.f32 %v1968_v47, %v1498_v17  ;;  %v1501_v24 = vsub.f32 %v1302_v5, %v1498_v17  ;;  %v1502_v25 = vsub.f32 %v1971_v10, %v1498_v17 }
 0x5fd   :  { %v1494_v26 = vsub.f32 %v1492_v18, %v1493_v16 }
 0x5ff   :  { %v1503_v40 = vadd.f32 1e-05, %v1494_v26 }
 0x601   :  { %2216 = vrsqrt.f32 %v1503_v40 }
 0x60b   :  { %v2217_v30 = vpop.eup %2216 }
 0x60c   :  { %v1505_v31 = vmul.f32 %v2217_v30, %v846_v28 }
 0x60e   :  { %v1509_v33 = vrot.slane %v1505_v31, %v2682_v35 }
 0x610   :  { %v1510_v36 = vmul.f32 %v1509_v33, %v1499_v21  ;;  %v1511_v37 = vmul.f32 %v1509_v33, %v1500_v23  ;;  %v1512_v38 = vmul.f32 %v1509_v33, %v1501_v24  ;;  %v1513_v39 = vmul.f32 %v1509_v33, %v1502_v25 }
 0x612   :  { %v1520_v41 = vadd.f32 %v1605_v34, %v1510_v36  ;;  %v1521_v42 = vadd.f32 %v1605_v34, %v1511_v37  ;;  %v1522_v47 = vadd.f32 %v1605_v34, %v1512_v38  ;;  %v1523_v48 = vadd.f32 %v1605_v34, %v1513_v39 }
 0x614   :  { %v1524_v49 = vmax.f32 %v1520_v41, 0.0  ;;  %v1525_v50 = vmax.f32 %v1521_v42, 0.0  ;;  %v1526_v57 = vmax.f32 %v1522_v47, 0.0  ;;  %v1527_v58 = vmax.f32 %v1523_v48, 0.0 }
 0x616   :  { %v1528_v35 = vadd.f32 %v1524_v49, %v2560_v8  ;;  %v1529_v59 = vadd.f32 %v1525_v50, %v2566_v27  ;;  %v1530_v62 = vadd.f32 %v1526_v57, %v2568_v29  ;;  %v1531_v2 = vadd.f32 %v1527_v58, %v2574_v32 }
 0x618   :  { %v1532_v10 = vmax.f32 %v1528_v35, 0.0  ;;  %v1533_v43 = vmax.f32 %v1529_v59, 0.0  ;;  %v1534_v5 = vmax.f32 %v1530_v62, 0.0  ;;  %v1535_v44 = vmax.f32 %v1531_v2, 0.0 }
 0x61a   :  { %1536 = vst.msk [vmem:[#allocation13] sm:$0xff] %vm148_vm0, %v1532_v10  ;;  %1537 = vst.msk [vmem:[#allocation13 + $0x8] sm:$0xff] %vm148_vm0, %v1533_v43 }
 0x61b   :  { %1538 = vst.msk [vmem:[#allocation13 + $0x10] sm:$0xff] %vm148_vm0, %v1534_v5  ;;  %1539 = vst.msk [vmem:[#allocation13 + $0x18] sm:$0xff] %vm148_vm0, %v1535_v44 }
 0x61c   :  { %2361 = shalt.err (!%p2358_p10)
}
 0x61d   :  { %s2362_s12 = scalar_lea.hbm %s2795_s10, 512 }
 0x61e   :  { %p2363_p11 = scmp.ne.s32.totalorder %s2795_s10, %s2362_s12  ;;  %p2366_p12 = scmp.lt.u32.totalorder %s2362_s12, %s2795_s10 }
 0x620   :  { %p2368_p13 = pnand %p2366_p12, %p2363_p11 }
 0x622   :  { %2371 = shalt.err (!%p2368_p13)
}
 0x623   :  { %1551 = dma.vmem_to_hbm [thread:$0]  %s1546_s11, 512, %s2795_s10, [#allocation4], %s2384_s25, %s2384_s25, %s2385_s26  }
 0x624   :  { %2380 = dma.done.wait [#allocation4], 512  }
 0x625   :  { %2381 = vsyncadd [#allocation4], 4294966784 }
 0x626   :  { %1555 = vsyncpa [#allocation3], 1 }
 0x627   :  { %1556 = vsyncpa [#allocation6], 1 }
 0x628   :  { %1557 = vsyncpa [#allocation9], 1 }
 0x629   :  { %1558 = vsyncpa [#allocation12], 1 }
 0x62a   :  { %1559 = vsyncpa [#allocation4], 1 }

</bundles_post_ra>
